<compile_context>
chip_gen: v6e
topology: v6e:2x2x1
jax: 0.10.0
libtpu: 0.0.40
codegen_flags: <defaults>
</compile_context>

<pallas_src>
import jax
import jax.numpy as jnp
from jax.experimental import pallas as pl
from jax.experimental.pallas import tpu as pltpu


_BETA = 30.0
_LANES = 128
_SUBLANES = 8
_PAD_ELEMS = _SUBLANES * _LANES        # 1024: pad granule -> rows % 8 == 0
_TILE_ROWS = 2048                      # 2048x128 f32 = 1 MiB/tile/array
_SMALL_ELEMS = 64 * 1024               # below this, fused XLA wins over a launch


def _shear_rate_kernel(s_ref, eta0_ref, n_ref, scr_ref, out_ref):
    # Load native dtype, compute in f32 (works on v5e which has no bf16 VPU/EUP).
    S = s_ref[...].astype(jnp.float32)
    eta0 = eta0_ref[...].astype(jnp.float32)
    n = n_ref[...].astype(jnp.float32)
    scr = scr_ref[...].astype(jnp.float32)

    diff = S - scr
    # Exact sigmoid: the kernel is HBM-bandwidth-bound, so EUP/VALU slack makes
    # the exact divide free, and exp overflow (+inf) cleanly yields weight 0.
    high_weight = 1.0 / (1.0 + jnp.exp(-_BETA * diff))
    # f_S = eta0*(1 - hw) + (eta0 - n*diff)*hw = eta0 - n*diff*hw
    out_ref[...] = (eta0 - n * diff * high_weight).astype(out_ref.dtype)


def _fused_jnp(S, eta_0, n, Scr):
    diff = S - Scr
    hw = jax.nn.sigmoid(_BETA * diff)
    lw = jax.nn.sigmoid(-_BETA * diff)
    return eta_0 * lw + (eta_0 - n * diff) * hw


def shear_rate(S, eta_0, n, beta, Scr, *, force_pallas=False):
    """Pallas implementation of ShearRate.forward.

    `beta` is accepted for signature parity but ignored (the PyTorch module
    hard-codes beta = 30 inside forward()).
    """
    del beta  # overridden to 30 inside the module, matching PyTorch semantics
    orig_shape = S.shape
    out_dtype = S.dtype
    total = S.size

    # Tiny inputs: the fixed pallas_call launch + single non-pipelined block
    # dominates; a fused elementwise expression is strictly faster.
    if total < _SMALL_ELEMS and not force_pallas:
        return _fused_jnp(S, eta_0, n, Scr).astype(out_dtype)

    # Pad the flat element count up to a multiple of 8*128 so every operand
    # reshapes to a lane-dense (rows, 128) slab with rows % 8 == 0. Padded
    # elements are 0 -> diff = 0 -> sigmoid(0) = 0.5: no inf/NaN, and the tail
    # is sliced off after the call.
    padded_total = ((total + _PAD_ELEMS - 1) // _PAD_ELEMS) * _PAD_ELEMS
    rows = padded_total // _LANES

    def _prep(x):
        flat = jnp.asarray(x).reshape(-1)
        if padded_total != total:
            flat = jnp.pad(flat, (0, padded_total - total))
        return flat.reshape(rows, _LANES)

    s2, e2, n2, scr2 = map(_prep, (S, eta_0, n, Scr))

    if rows <= _TILE_ROWS:
        # Single full-array block, grid of 1 (rows is a multiple of 8, so the
        # (8,128) block constraint is satisfied either way).
        block_rows = rows
        grid = (1,)
    else:
        # Large input: big tiles so per-step grid overhead amortizes; the last
        # (possibly partial) block is handled by Pallas masking, confined to
        # padded rows that are sliced away.
        block_rows = _TILE_ROWS
        grid = (pl.cdiv(rows, block_rows),)

    spec = pl.BlockSpec((block_rows, _LANES), lambda i: (i, 0))

    out = pl.pallas_call(
        _shear_rate_kernel,
        out_shape=jax.ShapeDtypeStruct((rows, _LANES), out_dtype),
        grid_spec=pltpu.PrefetchScalarGridSpec(
            num_scalar_prefetch=0,
            grid=grid,
            in_specs=[spec, spec, spec, spec],
            out_specs=spec,
        ),
        compiler_params=pltpu.CompilerParams(
            dimension_semantics=("parallel",),
            # 5 arrays x 2 bufs x 1 MiB = 10 MiB at 2048-row f32 tiles; set the
            # limit explicitly so v5e's 16 MiB scoped default has headroom and
            # v7x (64 MiB physical) is comfortably provisioned.
            vmem_limit_bytes=32 * 1024 * 1024,
        ),
    )(s2, e2, n2, scr2)

    out_flat = out.reshape(-1)
    if padded_total != total:
        out_flat = out_flat[:total]
    return out_flat.reshape(orig_shape)


def _reference(S, eta_0, n, Scr):
    beta = 30.0
    diff = S - Scr
    high_weight = 1.0 / (1.0 + jnp.exp(-beta * diff))
    low_weight = 1.0 / (1.0 + jnp.exp(beta * diff))
    high_shear = eta_0 - n * diff
    return eta_0 * low_weight + high_shear * high_weight


if __name__ == "__main__":
    key = jax.random.PRNGKey(0)
    k1, k2, k3, k4 = jax.random.split(key, 4)

    # Small NCHW-style shapes: batch=2, channels=4, spatial=16x16.
    shape = (2, 4, 16, 16)
    S = jax.random.uniform(k1, shape, jnp.float32, minval=0.0, maxval=2.0)
    eta_0 = jax.random.uniform(k2, shape, jnp.float32, minval=0.5, maxval=1.5)
    n = jax.random.uniform(k3, shape, jnp.float32, minval=0.0, maxval=0.5)
    Scr = jax.random.uniform(k4, shape, jnp.float32, minval=0.5, maxval=1.5)
    beta_unused = jnp.full(shape, 7.0, jnp.float32)  # ignored, as in PyTorch

    # Force the Pallas path so the kernel itself is exercised at this size.
    out = shear_rate(S, eta_0, n, beta_unused, Scr, force_pallas=True)
    out = jax.block_until_ready(out)
    ref = _reference(S, eta_0, n, Scr)
    assert out.shape == shape and out.dtype == jnp.float32
    assert jnp.allclose(out, ref, atol=1e-5, rtol=1e-5)

    # Second check: element count NOT a multiple of 128 exercises the
    # pad-to-(rows,128) path that replaced the old (1, total) fallback.
    shape2 = (3, 5, 7)
    k5, k6, k7, k8 = jax.random.split(jax.random.PRNGKey(1), 4)
    S2 = jax.random.uniform(k5, shape2, jnp.float32, minval=0.0, maxval=2.0)
    e2 = jax.random.uniform(k6, shape2, jnp.float32, minval=0.5, maxval=1.5)
    n2 = jax.random.uniform(k7, shape2, jnp.float32, minval=0.0, maxval=0.5)
    scr2 = jax.random.uniform(k8, shape2, jnp.float32, minval=0.5, maxval=1.5)
    out2 = shear_rate(S2, e2, n2, beta_unused, scr2, force_pallas=True)
    out2 = jax.block_until_ready(out2)
    ref2 = _reference(S2, e2, n2, scr2)
    assert out2.shape == shape2
    assert jnp.allclose(out2, ref2, atol=1e-5, rtol=1e-5)

    print("KERNEL_OK")
</pallas_src>

<mosaic_0001>
module attributes {stable_mosaic.version = 11 : i64} {
  func.func @_shear_rate_kernel(%arg0: i32, %arg1: memref<16x128xf32, #tpu.memory_space<vmem>>, %arg2: memref<16x128xf32, #tpu.memory_space<vmem>>, %arg3: memref<16x128xf32, #tpu.memory_space<vmem>>, %arg4: memref<16x128xf32, #tpu.memory_space<vmem>>, %arg5: memref<16x128xf32, #tpu.memory_space<vmem>>) attributes {dimension_semantics = [#tpu.dimension_semantics<parallel>], iteration_bounds = array<i64: 1>, scalar_prefetch = 0 : i64, scratch_operands = 0 : i64, tpu.core_type = #tpu.core_type<tc>, window_params = [{transform_indices = @transform_0, window_bounds = array<i64: 16, 128>}, {transform_indices = @transform_1, window_bounds = array<i64: 16, 128>}, {transform_indices = @transform_2, window_bounds = array<i64: 16, 128>}, {transform_indices = @transform_3, window_bounds = array<i64: 16, 128>}, {transform_indices = @transform_4, window_bounds = array<i64: 16, 128>}]} {
    %c0 = arith.constant 0 : index
    %c0_0 = arith.constant 0 : index
    %0 = vector.load %arg1[%c0, %c0_0] : memref<16x128xf32, #tpu.memory_space<vmem>>, vector<16x128xf32>
    %c0_1 = arith.constant 0 : index
    %c0_2 = arith.constant 0 : index
    %1 = vector.load %arg2[%c0_1, %c0_2] : memref<16x128xf32, #tpu.memory_space<vmem>>, vector<16x128xf32>
    %c0_3 = arith.constant 0 : index
    %c0_4 = arith.constant 0 : index
    %2 = vector.load %arg3[%c0_3, %c0_4] : memref<16x128xf32, #tpu.memory_space<vmem>>, vector<16x128xf32>
    %c0_5 = arith.constant 0 : index
    %c0_6 = arith.constant 0 : index
    %3 = vector.load %arg4[%c0_5, %c0_6] : memref<16x128xf32, #tpu.memory_space<vmem>>, vector<16x128xf32>
    %4 = arith.subf %0, %3 : vector<16x128xf32>
    %cst = arith.constant -3.000000e+01 : f32
    %5 = vector.broadcast %cst : f32 to vector<16x128xf32>
    %6 = arith.mulf %5, %4 : vector<16x128xf32>
    %7 = math.exp %6 : vector<16x128xf32>
    %cst_7 = arith.constant 1.000000e+00 : f32
    %8 = vector.broadcast %cst_7 : f32 to vector<16x128xf32>
    %9 = arith.addf %8, %7 : vector<16x128xf32>
    %cst_8 = arith.constant 1.000000e+00 : f32
    %10 = vector.broadcast %cst_8 : f32 to vector<16x128xf32>
    %11 = arith.divf %10, %9 : vector<16x128xf32>
    %12 = arith.mulf %2, %4 : vector<16x128xf32>
    %13 = arith.mulf %12, %11 : vector<16x128xf32>
    %14 = arith.subf %1, %13 : vector<16x128xf32>
    %c0_9 = arith.constant 0 : index
    %c0_10 = arith.constant 0 : index
    %15 = vector.load %arg5[%c0_9, %c0_10] : memref<16x128xf32, #tpu.memory_space<vmem>>, vector<16x128xf32>
    tpu.vector_store %arg5[%c0_9, %c0_10], %14 {strides = array<i32>} : memref<16x128xf32, #tpu.memory_space<vmem>>, vector<16x128xf32>,
    return
  }
  func.func @transform_0(%arg0: i32) -> (i32, i32) {
    %c0_i32 = arith.constant 0 : i32
    %c0_i32_0 = arith.constant 0 : i32
    return %arg0, %c0_i32 : i32, i32
  }
  func.func @transform_1(%arg0: i32) -> (i32, i32) {
    %c0_i32 = arith.constant 0 : i32
    %c0_i32_0 = arith.constant 0 : i32
    return %arg0, %c0_i32 : i32, i32
  }
  func.func @transform_2(%arg0: i32) -> (i32, i32) {
    %c0_i32 = arith.constant 0 : i32
    %c0_i32_0 = arith.constant 0 : i32
    return %arg0, %c0_i32 : i32, i32
  }
  func.func @transform_3(%arg0: i32) -> (i32, i32) {
    %c0_i32 = arith.constant 0 : i32
    %c0_i32_0 = arith.constant 0 : i32
    return %arg0, %c0_i32 : i32, i32
  }
  func.func @transform_4(%arg0: i32) -> (i32, i32) {
    %c0_i32 = arith.constant 0 : i32
    %c0_i32_0 = arith.constant 0 : i32
    return %arg0, %c0_i32 : i32, i32
  }
}

</mosaic_0001>

<bundles_post_ra>
// kernel: tpu_custom_call.1
= control target key start
LH: loop header
LB: loop body
LE: loop exit
PB: predicated region body
PF: predicated region fallthrough
CT: control target
= control target key end

     0   :  { %9 = vsyncpa [#allocation3], 0  ;;  %s307_s0 = inlined_call_operand.hbm [shape: f32[16,128], index: 0, kind: input, shape index: {}]   ;;  %s308_s1 = inlined_call_operand.hbm [shape: f32[16,128], index: 1, kind: input, shape index: {}]   ;;  %s309_s2 = inlined_call_operand.hbm [shape: f32[16,128], index: 2, kind: input, shape index: {}]   ;;  %s310_s3 = inlined_call_operand.hbm [shape: f32[16,128], index: 3, kind: input, shape index: {}]   ;;  %s311_s4 = inlined_call_operand.hbm [shape: f32[16,128], index: 4, kind: output, shape index: {}]  }
   0x1   :  { %10 = vsyncpa [#allocation6], 0 }
   0x2   :  { %11 = vsyncpa [#allocation9], 0 }
   0x3   :  { %12 = vsyncpa [#allocation4], 0  ;;  %s245_s15 = smov [#allocation5]   ;;  %s246_s17 = smov [#allocation2]  }
   0x4   :  { %s30_s16 = sshll.u32 %s245_s15, 4  ;;  %s18_s18 = sshll.u32 %s246_s17, 4  ;;  %s31_s16 = int_to_ptr.vmem [resolvable:$true] %s30_s16  ;;  %s19_s18 = int_to_ptr.vmem [resolvable:$true] %s18_s18 }
   0x5   :  { %s145_s19 = scalar_lea.vmem %s31_s16, 256  ;;  %p150_p1 = scmp.lt.s32.totalorder %s31_s16, %s31_s16 }
   0x6   :  { %p146_p0 = scmp.ne.s32.totalorder %s31_s16, %s145_s19  ;;  %p151_p2 = scmp.lt.s32.totalorder %s145_s19, %s145_s19 }
   0x8   :  { %p152_p3 = por %p151_p2, %p150_p1 }
   0xa   :  { %p153_p4 = pnand %p152_p3, %p146_p0 }
   0xc   :  { %156 = shalt.err (!%p153_p4)
}
   0xd   :  { %s247_s20 = smov 128   ;;  %s248_s21 = smov 8  }
   0xe   :  { %36 = dma.hbm_to_vmem [thread:$0]  %s308_s1, 256, %s31_s16, [#allocation6], %s247_s20, %s247_s20, %s248_s21  }
   0xf   :  { %s165_s24 = scalar_lea.vmem %s19_s18, 256  ;;  %p170_p6 = scmp.lt.s32.totalorder %s19_s18, %s19_s18 }
  0x10   :  { %p166_p5 = scmp.ne.s32.totalorder %s19_s18, %s165_s24  ;;  %p171_p7 = scmp.lt.s32.totalorder %s165_s24, %s165_s24 }
  0x12   :  { %p172_p8 = por %p171_p7, %p170_p6 }
  0x14   :  { %p173_p9 = pnand %p172_p8, %p166_p5 }
  0x16   :  { %176 = shalt.err (!%p173_p9)
}
  0x17   :  { %24 = dma.hbm_to_vmem [thread:$0]  %s307_s0, 256, %s19_s18, [#allocation3], %s247_s20, %s247_s20, %s248_s21  }
  0x18   :  { %s249_s27 = smov [#allocation7]   ;;  %s250_s29 = smov [#allocation8]  }
  0x19   :  { %s42_s28 = sshll.u32 %s249_s27, 4  ;;  %s54_s30 = sshll.u32 %s250_s29, 4  ;;  %s43_s28 = int_to_ptr.vmem [resolvable:$true] %s42_s28  ;;  %s55_s30 = int_to_ptr.vmem [resolvable:$true] %s54_s30 }
  0x1a   :  { %s185_s1 = scalar_lea.vmem %s43_s28, 256  ;;  %p190_p11 = scmp.lt.s32.totalorder %s43_s28, %s43_s28 }
  0x1b   :  { %p186_p10 = scmp.ne.s32.totalorder %s43_s28, %s185_s1  ;;  %p191_p12 = scmp.lt.s32.totalorder %s185_s1, %s185_s1 }
  0x1d   :  { %p192_p13 = por %p191_p12, %p190_p11 }
  0x1f   :  { %p193_p0 = pnand %p192_p13, %p186_p10 }
  0x21   :  { %196 = shalt.err (!%p193_p0)
}
  0x22   :  { %48 = dma.hbm_to_vmem [thread:$0]  %s309_s2, 256, %s43_s28, [#allocation6], %s247_s20, %s247_s20, %s248_s21  }
  0x23   :  { %s205_s0 = scalar_lea.vmem %s55_s30, 256  ;;  %p210_p2 = scmp.lt.s32.totalorder %s55_s30, %s55_s30 }
  0x24   :  { %p206_p1 = scmp.ne.s32.totalorder %s55_s30, %s205_s0  ;;  %p211_p3 = scmp.lt.s32.totalorder %s205_s0, %s205_s0 }
  0x26   :  { %p212_p4 = por %p211_p3, %p210_p2 }
  0x28   :  { %p213_p5 = pnand %p212_p4, %p206_p1 }
  0x2a   :  { %216 = shalt.err (!%p213_p5)
}
  0x2b   :  { %60 = dma.hbm_to_vmem [thread:$0]  %s310_s3, 256, %s55_s30, [#allocation9], %s247_s20, %s247_s20, %s248_s21  }
  0x2c   :  { %237 = dma.done.wait [#allocation3], 256  }
  0x2d   :  { %238 = vsyncadd [#allocation3], 4294967040 }
  0x2e   :  { %239 = dma.done.wait [#allocation6], 512  }
  0x2f   :  { %240 = vsyncadd [#allocation6], 4294966784 }
  0x30   :  { %241 = dma.done.wait [#allocation9], 256  }
  0x31   :  { %242 = vsyncadd [#allocation9], 4294967040  ;;  %v73_v0 = vld [vmem:[#allocation2] sm:$0xff]  ;;  %v79_v1 = vld [vmem:[#allocation8] sm:$0xff]  ;;  %s251_s2 = smov [#allocation10]  }
  0x32   :  { %v74_v2 = vld [vmem:[#allocation2 + $0x8] sm:$0xff]  ;;  %v81_v3 = vsub.f32 %v73_v0, %v79_v1  ;;  %v80_v4 = vld [vmem:[#allocation8 + $0x8] sm:$0xff]  ;;  %v77_v14 = vld [vmem:[#allocation7] sm:$0xff]  ;;  %s108_s3 = sshll.u32 %s251_s2, 4  ;;  %s109_s3 = int_to_ptr.vmem [resolvable:$true] %s108_s3 }
  0x33   :  { %v82_v5 = vsub.f32 %v74_v2, %v80_v4  ;;  %v78_v15 = vld [vmem:[#allocation7 + $0x8] sm:$0xff]  ;;  %v75_v19 = vld [vmem:[#allocation5] sm:$0xff]  ;;  %v76_v22 = vld [vmem:[#allocation5 + $0x8] sm:$0xff]  ;;  %s217_s9 = scalar_lea.vmem %s109_s3, 256  ;;  %p222_p7 = scmp.lt.s32.totalorder %s109_s3, %s109_s3 }
  0x34   :  { %v83_v6 = vmul.f32 -30.0, %v81_v3  ;;  %v95_v16 = vmul.f32 %v81_v3, %v77_v14  ;;  %p218_p6 = scmp.ne.s32.totalorder %s109_s3, %s217_s9  ;;  %p223_p8 = scmp.lt.s32.totalorder %s217_s9, %s217_s9 }
  0x35   :  { %v84_v7 = vmul.f32 -30.0, %v82_v5  ;;  %v96_v17 = vmul.f32 %v82_v5, %v78_v15 }
  0x36   :  { %v85_v8 = vmul.f32 1.442695, %v83_v6  ;;  %p224_p9 = por %p223_p8, %p222_p7 }
  0x37   :  { %v87_v9 = vmul.f32 1.442695, %v84_v7 }
  0x38   :  { %129 = vpow2.f32 %v85_v8  ;;  %p225_p10 = pnand %p224_p9, %p218_p6 }
  0x39   :  { %131 = vpow2.f32 %v87_v9 }
  0x45   :  { %v130_v10 = vpop.eup %129 }
  0x46   :  { %v132_v11 = vpop.eup %131  ;;  %v89_v12 = vadd.f32 1.0, %v130_v10 }
  0x47   :  { %v90_v13 = vadd.f32 1.0, %v132_v11 }
  0x48   :  { %133 = vrcp.f32 %v89_v12 }
  0x49   :  { %135 = vrcp.f32 %v90_v13 }
  0x55   :  { %v134_v18 = vpop.eup %133 }
  0x56   :  { %v136_v20 = vpop.eup %135  ;;  %v97_v21 = vmul.f32 %v134_v18, %v95_v16 }
  0x57   :  { %v98_v23 = vmul.f32 %v136_v20, %v96_v17 }
  0x58   :  { %v99_v24 = vsub.f32 %v75_v19, %v97_v21 }
  0x59   :  { %v100_v25 = vsub.f32 %v76_v22, %v98_v23 }
  0x5a   :  { %101 = vst [vmem:[#allocation10] sm:$0xff] %v99_v24 }
  0x5b   :  { %102 = vst [vmem:[#allocation10 + $0x8] sm:$0xff] %v100_v25 }
  0x5c   :  { %228 = shalt.err (!%p225_p10)
}
  0x5d   :  { %114 = dma.vmem_to_hbm [thread:$0]  %s109_s3, 256, %s311_s4, [#allocation4], %s247_s20, %s247_s20, %s248_s21  }
  0x5e   :  { %243 = dma.done.wait [#allocation4], 256  }
  0x5f   :  { %244 = vsyncadd [#allocation4], 4294967040 }
  0x60   :  { %118 = vsyncpa [#allocation3], 1 }
  0x61   :  { %119 = vsyncpa [#allocation6], 1 }
  0x62   :  { %120 = vsyncpa [#allocation9], 1 }
  0x63   :  { %121 = vsyncpa [#allocation4], 1 }

</bundles_post_ra>
